<compile_context>
chip_gen: v5e
topology: v5e:2x2
jax: 0.10.0
libtpu: 0.0.40
codegen_flags: <defaults>
</compile_context>

<pallas_src>
import jax
import jax.numpy as jnp
from jax.experimental import pallas as pl
from jax.experimental.pallas import tpu as pltpu


# ----------------------------------------------------------------------------
# Kernel body: pure VPU elementwise work on one (tile_o, tile_i) block.
# ----------------------------------------------------------------------------
def _u_quant_weight_kernel(w_ref, s_ref, o_ref):
    w = w_ref[...].astype(jnp.float32)          # (TO, TI)
    s = s_ref[...]                               # (TO, 4) packed per-row scales
    scale_in = s[:, 0:1]                         # n / alpha
    n_lvl = s[:, 1:2]                            # 2^(round(bit)-1) - 1
    scale_out = s[:, 2:3]                        # alpha / n

    # clip(w / alpha, -1, 1) * n  ==  clip(w * (n/alpha), -n, n)   (n >= 0)
    w_int = jnp.round(jnp.clip(w * scale_in, -n_lvl, n_lvl))
    o_ref[...] = (w_int * scale_out).astype(o_ref.dtype)


# ----------------------------------------------------------------------------
# Tiling helpers.
# ----------------------------------------------------------------------------
def _pick_tile(dim, align, target):
    """Tile for one axis: a multiple of `align`, <= target (or the full extent
    for small dims).  Used with a pl.cdiv grid, so a non-divisor tile is fine:
    Pallas pads/masks the trailing partial block."""
    if dim <= target:
        return dim                       # full extent is always a legal block dim
    tile = max(align, (target // align) * align)
    # Prefer an exact divisor close to the target (avoids a padded edge block),
    # but never shrink below ~half the target (tiny tiles just add grid steps).
    t = tile
    floor = max(align, tile // 2)
    while t >= floor:
        if dim % t == 0:
            return t
        t -= align
    return tile


def _vmem_capacity_bytes():
    """Best-effort query of per-core VMEM; conservative (v7x) fallback."""
    try:
        info = pltpu.get_tpu_info()
        cap = getattr(info, "vmem_capacity_bytes", None)
        if cap:
            return int(cap)
    except Exception:
        pass
    return 64 * 1024 * 1024


# ----------------------------------------------------------------------------
# Wrapper.
# ----------------------------------------------------------------------------
def u_quant_weight_forward(weight, alpha, bit, *, block_rows=None, block_cols=None,
                           out_dtype=None, guard_min_levels=True):
    """weight: [O, I], alpha: [O, 1], bit: [O, 1] -> quantized weight [O, I]."""
    O, I = weight.shape
    out_dtype = weight.dtype if out_dtype is None else jnp.dtype(out_dtype)

    # --- host-side per-output-channel preprocessing (tiny [O,1] arrays) ------
    alpha_f = alpha.astype(jnp.float32).reshape(O, 1)
    bit_f = bit.astype(jnp.float32).reshape(O, 1)
    n_lvl = jnp.exp2(jnp.round(bit_f) - 1.0) - 1.0      # e.g. bit=4 -> 7 levels
    if guard_min_levels:
        # round(bit) == 1 gives n = 0 and NaN/Inf in the reference module;
        # clamp to >= 1 level for numerical robustness (no effect for bit >= 2).
        n_lvl = jnp.maximum(n_lvl, 1.0)
    scale_in = n_lvl / alpha_f                           # fold clip-scale and 1/alpha
    scale_out = alpha_f / n_lvl                          # dequant scale
    # Pack the three per-row vectors (+ one pad column) into a single (O, 4) input.
    scales = jnp.concatenate(
        [scale_in, n_lvl, scale_out, jnp.zeros_like(n_lvl)], axis=1)

    # --- generation-aware block sizes and VMEM budget ------------------------
    vmem_cap = _vmem_capacity_bytes()
    if vmem_cap >= 100 * 1024 * 1024:        # v5e / v6e: 128 MiB VMEM
        dflt_rows, dflt_cols = 1024, 2048    # ~8 MiB f32 per block
        vmem_limit = 96 * 1024 * 1024
    else:                                    # v7x: 64 MiB / TensorCore
        dflt_rows, dflt_cols = 512, 2048     # ~4 MiB f32 per block
        vmem_limit = 48 * 1024 * 1024
    block_rows = dflt_rows if block_rows is None else block_rows
    block_cols = dflt_cols if block_cols is None else block_cols

    # Sublane alignment follows the narrowest packed dtype among in/out.
    in_align = 8 * max(1, 4 // jnp.dtype(weight.dtype).itemsize)
    out_align = 8 * max(1, 4 // out_dtype.itemsize)
    sub_align = max(in_align, out_align)

    tile_o = _pick_tile(O, sub_align, block_rows)
    tile_i = _pick_tile(I, 128, block_cols)
    grid_o = pl.cdiv(O, tile_o)
    grid_i = pl.cdiv(I, tile_i)

    # v7x has 2 TensorCores: guarantee >=2 parallel blocks when the shape allows.
    if grid_o * grid_i < 2:
        if I >= 2 * 128:
            tile_i = max(128, ((I // 2) // 128) * 128)
            grid_i = pl.cdiv(I, tile_i)
        elif O >= 2 * sub_align:
            tile_o = max(sub_align, ((O // 2) // sub_align) * sub_align)
            grid_o = pl.cdiv(O, tile_o)

    return pl.pallas_call(
        _u_quant_weight_kernel,
        out_shape=jax.ShapeDtypeStruct((O, I), out_dtype),
        grid_spec=pltpu.PrefetchScalarGridSpec(
            num_scalar_prefetch=0,
            grid=(grid_o, grid_i),
            in_specs=[
                pl.BlockSpec((tile_o, tile_i), lambda i, j: (i, j)),  # weight
                pl.BlockSpec((tile_o, 4), lambda i, j: (i, 0)),       # packed scales
            ],
            out_specs=pl.BlockSpec((tile_o, tile_i), lambda i, j: (i, j)),
        ),
        compiler_params=pltpu.CompilerParams(
            dimension_semantics=("parallel", "parallel"),
            vmem_limit_bytes=vmem_limit,
        ),
    )(weight, scales)


# ----------------------------------------------------------------------------
# Reference implementations + module-style init (for self-test).
# ----------------------------------------------------------------------------
def init_params(key, out_channels, bit_init=4.0, alpha_init=0.1, alpha_std=0.1):
    """Deterministic re-implementation of the module's __init__."""
    alpha = jnp.abs(
        alpha_init + alpha_std * jax.random.normal(key, (out_channels, 1), jnp.float32)
    )
    bit = jnp.full((out_channels, 1), bit_init, dtype=jnp.float32)
    return alpha, bit


def reference_forward_module(weight, alpha, bit):
    """Literal module formula: clip(w/alpha,-1,1) -> *n -> round -> /n -> *alpha."""
    n = jnp.exp2(jnp.round(bit) - 1.0) - 1.0
    w_clip = jnp.clip(weight / alpha, -1.0, 1.0)
    return jnp.round(w_clip * n) / n * alpha


def reference_forward_factored(weight, alpha, bit):
    """Mathematically identical formula, factored exactly like the kernel."""
    n = jnp.exp2(jnp.round(bit) - 1.0) - 1.0
    return jnp.round(jnp.clip(weight * (n / alpha), -n, n)) * (alpha / n)


if __name__ == "__main__":
    key = jax.random.PRNGKey(0)
    k_w, k_a, k_w2 = jax.random.split(key, 3)

    # --- small, lane-aligned case (grid split along I so both TCs get work) ---
    out_channels, in_channels = 128, 256
    bit_init = 4.0

    weight = jax.random.normal(k_w, (out_channels, in_channels), jnp.float32) * 0.05
    alpha, bit = init_params(k_a, out_channels, bit_init=bit_init)

    w_q = jax.block_until_ready(u_quant_weight_forward(weight, alpha, bit))
    assert w_q.shape == weight.shape and w_q.dtype == weight.dtype

    # Strict check vs a plain-JAX implementation with identical factorization.
    ref_exact = reference_forward_factored(weight, alpha, bit)
    assert float(jnp.max(jnp.abs(w_q - ref_exact))) < 1e-6, "kernel mismatch vs reference"

    # Check vs the literal module formula; allow at most one quant step of
    # difference (ulp-level reassociation can flip a round at an exact .5 tie).
    ref_module = reference_forward_module(weight, alpha, bit)
    n_lvl = jnp.exp2(jnp.round(bit) - 1.0) - 1.0
    quant_step = float(jnp.max(alpha / n_lvl))
    assert float(jnp.max(jnp.abs(w_q - ref_module))) <= quant_step * 1.001

    # --- unaligned case exercising the cdiv grid with padded edge blocks ------
    O2, I2 = 100, 200
    weight2 = jax.random.normal(k_w2, (O2, I2), jnp.float32) * 0.05
    alpha2, bit2 = init_params(k_a, O2, bit_init=bit_init)
    w_q2 = jax.block_until_ready(
        u_quant_weight_forward(weight2, alpha2, bit2, block_rows=64, block_cols=128))
    ref2 = reference_forward_factored(weight2, alpha2, bit2)
    assert float(jnp.max(jnp.abs(w_q2 - ref2))) < 1e-6, "padded-block path mismatch"

    print("KERNEL_OK")
</pallas_src>

<mosaic_0001>
module attributes {stable_mosaic.version = 11 : i64} {
  func.func @_u_quant_weight_kernel(%arg0: i32, %arg1: i32, %arg2: memref<128x128xf32, #tpu.memory_space<vmem>>, %arg3: memref<128x4xf32, #tpu.memory_space<vmem>>, %arg4: memref<128x128xf32, #tpu.memory_space<vmem>>) attributes {dimension_semantics = [#tpu.dimension_semantics<parallel>, #tpu.dimension_semantics<parallel>], iteration_bounds = array<i64: 1, 2>, scalar_prefetch = 0 : i64, scratch_operands = 0 : i64, tpu.core_type = #tpu.core_type<tc>, window_params = [{transform_indices = @transform_0, window_bounds = array<i64: 128, 128>}, {transform_indices = @transform_1, window_bounds = array<i64: 128, 4>}, {transform_indices = @transform_2, window_bounds = array<i64: 128, 128>}]} {
    %c0 = arith.constant 0 : index
    %c0_0 = arith.constant 0 : index
    %0 = vector.load %arg2[%c0, %c0_0] : memref<128x128xf32, #tpu.memory_space<vmem>>, vector<128x128xf32>
    %c0_1 = arith.constant 0 : index
    %c0_2 = arith.constant 0 : index
    %1 = vector.load %arg3[%c0_1, %c0_2] : memref<128x4xf32, #tpu.memory_space<vmem>>, vector<128x4xf32>
    %2 = vector.extract_strided_slice %1 {offsets = [0, 0], sizes = [128, 1], strides = [1, 1]} : vector<128x4xf32> to vector<128x1xf32>
    %3 = vector.extract_strided_slice %1 {offsets = [0, 1], sizes = [128, 1], strides = [1, 1]} : vector<128x4xf32> to vector<128x1xf32>
    %4 = vector.extract_strided_slice %1 {offsets = [0, 2], sizes = [128, 1], strides = [1, 1]} : vector<128x4xf32> to vector<128x1xf32>
    %5 = vector.broadcast %2 : vector<128x1xf32> to vector<128x128xf32>
    %6 = arith.mulf %0, %5 : vector<128x128xf32>
    %cst = arith.constant 0.000000e+00 : f32
    %7 = vector.broadcast %cst : f32 to vector<128x1xf32>
    %8 = arith.subf %7, %3 : vector<128x1xf32>
    %9 = vector.broadcast %8 : vector<128x1xf32> to vector<128x128xf32>
    %10 = arith.maximumf %9, %6 : vector<128x128xf32>
    %11 = vector.broadcast %3 : vector<128x1xf32> to vector<128x128xf32>
    %12 = arith.minimumf %11, %10 : vector<128x128xf32>
    %13 = math.roundeven %12 : vector<128x128xf32>
    %14 = vector.broadcast %4 : vector<128x1xf32> to vector<128x128xf32>
    %15 = arith.mulf %13, %14 : vector<128x128xf32>
    %c0_3 = arith.constant 0 : index
    %c0_4 = arith.constant 0 : index
    %16 = vector.load %arg4[%c0_3, %c0_4] : memref<128x128xf32, #tpu.memory_space<vmem>>, vector<128x128xf32>
    tpu.vector_store %arg4[%c0_3, %c0_4], %15 {strides = array<i32>} : memref<128x128xf32, #tpu.memory_space<vmem>>, vector<128x128xf32>,
    return
  }
  func.func @transform_0(%arg0: i32, %arg1: i32) -> (i32, i32) {
    %c0_i32 = arith.constant 0 : i32
    return %arg0, %arg1 : i32, i32
  }
  func.func @transform_1(%arg0: i32, %arg1: i32) -> (i32, i32) {
    %c0_i32 = arith.constant 0 : i32
    %c0_i32_0 = arith.constant 0 : i32
    return %arg0, %c0_i32 : i32, i32
  }
  func.func @transform_2(%arg0: i32, %arg1: i32) -> (i32, i32) {
    %c0_i32 = arith.constant 0 : i32
    return %arg0, %arg1 : i32, i32
  }
}

</mosaic_0001>

<bundles_post_ra>
// kernel: tpu_custom_call.1
= control target key start
LH: loop header
LB: loop body
LE: loop exit
PB: predicated region body
PF: predicated region fallthrough
CT: control target
= control target key end

     0   :  { %7 = vsyncpa [#allocation3], 0  ;;  %s1661_s0 = inlined_call_operand.hbm [shape: f32[128,256], index: 0, kind: input, shape index: {}]   ;;  %s1662_s1 = inlined_call_operand.vmem [shape: f32[128,4], index: 1, kind: input, shape index: {}]   ;;  %s1663_s2 = inlined_call_operand.hbm [shape: f32[128,256], index: 2, kind: output, shape index: {}]  }
   0x1   :  { %9 = vsyncpa [#allocation3 + $0x1], 0 }
   0x2   :  { %10 = vsyncpa [#allocation4], 0 }
   0x3   :  { %12 = vsyncpa [#allocation4 + $0x1], 0  ;;  %s1116_s9 = smov 0   ;;  %s1118_s10 = smov 0  }
   0x4   :  { %s1120_s11 = smov 0   ;;  %s1122_s12 = smov 0  }
   0x5   :  { %s1124_s13 = smov 0   ;;  %s1126_s14 = smov 0  }
   0x6 LB: > { %s756_s15 = sadd.s32 4294967295, %s1090_s14   ;;  %s757_s16 = sadd.s32 4294967294, %s1090_s14   ;;  %s1090_s14 = sphi %s1126_s14, %s18_s14   ;;  %s1086_s13 = sphi %s1124_s13, %s1680_s13   ;;  %s1082_s12 = sphi %s1122_s12, %s1679_s12   ;;  %s1078_s11 = sphi %s1120_s11, %s1678_s11   ;;  %s1074_s10 = sphi %s1118_s10, %s1677_s10   ;;  %s1070_s9 = sphi %s1116_s9, %s1676_s9  }
   0x7   : > { %s27_s17 = sadd.s32 1, %s1086_s13  ;;  %s39_s18 = sadd.s32 1, %s1078_s11 }
   0x8   : > { %p28_p0 = scmp.ge.s32.totalorder %s27_s17, 2  ;;  %p46_p1 = scmp.ne.s32.totalorder %s1078_s11, %s1074_s10 }
   0x9   : > { %p47_p2 = scmp.eq.s32.totalorder %s1090_s14, 0  ;;  %p52_p3 = scmp.ne.s32.totalorder %s1074_s10, %s1070_s9 }
   0xa   : > { %s1682_s17 = smov (%p28_p0, %s27_s17), 0  ;;  %p53_p5 = scmp.eq.s32.totalorder %s756_s15, 0 }
   0xb   : > { %p1157_p4 = por %p47_p2, %p46_p1  ;;  %s35_s20 = ssub.s32 %s1086_s13, %s1682_s17 }
   0xc   : > { %p104_p6 = scmp.eq.s32.totalorder %s756_s15, 1  ;;  %p37_p7 = scmp.eq.s32.totalorder %s35_s20, 0 }
   0xd   : > { %p1163_p8 = por %p53_p5, %p52_p3  ;;  %p110_p10 = scmp.eq.s32.totalorder %s757_s16, 1 }
   0xe   : > { %p1167_p9 = por %p104_p6, %p46_p1  ;;  %p760_p12 = scmp.ge.s32.totalorder %s1090_s14, 2 }
   0xf   : > { %s1172_s23 = scalar_select %p37_p7, %s1078_s11, %s39_s18  }
  0x10   : > { %p1174_p11 = por %p110_p10, %p52_p3  ;;  %p910_p13 = scmp.lt.s32.totalorder %s1090_s14, 2 }
  0x11   : > { %s139_s25 = sand.u32 1, %s1078_s11   ;;  %s762_s27 = sshll.u32 %s1086_s13, 3 }
  0x12   : > { %s761_s26 = sshll.u32 %s139_s25, 7  ;;  %s150_s30 = scalar_lea.hbm %s1661_s0, %s762_s27 }
  0x13   : > { %s143_s3 = scalar_lea.vmem [#allocation2], %s761_s26  ;;  %s151_s5 = sshll.u32 %s150_s30, 4  ;;  %s152_s5 = int_to_ptr.hbm [resolvable:$true] %s151_s5 }
  0x14   : > { %s153_s4 = sshll.u32 %s143_s3, 4  ;;  %p903_p0 = pnand %p910_p13, %p1157_p4  ;;  %s154_s4 = int_to_ptr.vmem [resolvable:$true] %s153_s4 }
  0x15   : > { %s140_s6 = scalar_lea.sflag [#allocation3], %s139_s25  ;;  %s1092_s7 = smov 256  }
  0x16   : > { %s1093_s8 = smov 128   ;;  %s1094_s15 = smov 8  }
  0x17   : > { %905 = dma.hbm_to_vmem [thread:$0]  (!%p903_p0), %s152_s5, 2048, %s154_s4, %s140_s6, %s1092_s7, %s1093_s8, %s1094_s15  }
  0x18   : > { %p763_p1 = scmp.ge.s32.totalorder %s1090_s14, 1  ;;  %p161_p2 = scmp.lt.s32.totalorder %s1090_s14, 3 }
  0x1a   : > { %p162_p3 = pnand %p763_p1, %p161_p2 }
  0x1b   : > { %s1190_s16 = sand.u32 (!%p162_p3), 1, %s1074_s10  }
  0x1c   : > { %165 = sbr.rel (%p162_p3) target bundleno = 330 (0x14a), region = 28  ;;  %s764_s18 = sshll.u32 (!%p162_p3), %s1190_s16, 7 }
  0x1d   : > { %s168_s20 = scalar_lea.sflag (!%p162_p3), [#allocation3], %s1190_s16  ;;  %s1196_s19 = scalar_lea.vmem (!%p162_p3), [#allocation2], %s764_s18 }
  0x21   : > { %1061 = dma.done.wait (%p1163_p8), %s168_s20, 2048  }
  0x22   : > { %1063 = vsyncadd (%p1163_p8), %s168_s20, 4294965248  ;;  %v1095_v0 = vmov 0   ;;  %v1205_v1 = vld [vmem:[%s1662_s1 + $0x20] sm:$0xff]  ;;  %v1210_v2 = vld [vmem:[%s1662_s1 + $0x10] sm:$0xff]  ;;  %v1096_v19 = vmov 1   ;;  %v1097_v45 = vmov 2  }
  0x23   : > { %971 = vset.pattern.permute.xlu2 %v1095_v0  ;;  %970 = vset.pattern.permute.xlu1 %v1095_v0  ;;  %v1215_v3 = vld [vmem:[%s1662_s1] sm:$0xff]  ;;  %v1223_v4 = vld [vmem:[%s1662_s1 + $0x28] sm:$0xff]  ;;  %v1228_v5 = vld [vmem:[%s1662_s1 + $0x18] sm:$0xff]  ;;  %v338_v20 = vsub.f32 0.0, %v1205_v1  ;;  %v336_v21 = vsub.f32 0.0, %v1210_v2  ;;  %s1028_s7 = scalar_lea.hbm %s1663_s2, 256 }
  0x24   : > { %969 = vset.pattern.permute.xlu0 %v1095_v0  ;;  %260 = vperm.xlu2 %971, %v1205_v1   ;;  %v1233_v6 = vld [vmem:[%s1662_s1 + $0x8] sm:$0xff]  ;;  %v1241_v7 = vld [vmem:[%s1662_s1 + $0x40] sm:$0xff]  ;;  %v1246_v8 = vld [vmem:[%s1662_s1 + $0x38] sm:$0xff]  ;;  %v334_v18 = vsub.f32 0.0, %v1215_v3  ;;  %v337_v22 = vsub.f32 0.0, %v1228_v5  ;;  %v339_v25 = vsub.f32 0.0, %v1223_v4 }
  0x25   : > { %250 = vperm.xlu1 %970, %v1210_v2   ;;  %240 = vperm.xlu0 %969, %v1215_v3   ;;  %v1251_v9 = vld [vmem:[%s1662_s1 + $0x30] sm:$0xff]  ;;  %v1259_v10 = vld [vmem:[%s1662_s1 + $0x58] sm:$0xff]  ;;  %v1269_v12 = vld [vmem:[%s1662_s1 + $0x48] sm:$0xff]  ;;  %v335_v16 = vsub.f32 0.0, %v1233_v6  ;;  %v341_v24 = vsub.f32 0.0, %v1246_v8  ;;  %v342_v28 = vsub.f32 0.0, %v1241_v7 }
  0x26   : > { %v1264_v11 = vld [vmem:[%s1662_s1 + $0x50] sm:$0xff]  ;;  %v1282_v14 = vld [vmem:[%s1662_s1 + $0x68] sm:$0xff]  ;;  %v1287_v15 = vld [vmem:[%s1662_s1 + $0x60] sm:$0xff]  ;;  %v340_v23 = vsub.f32 0.0, %v1251_v9  ;;  %v343_v26 = vsub.f32 0.0, %v1269_v12  ;;  %v345_v31 = vsub.f32 0.0, %v1259_v10 }
  0x27   : > { %v1277_v13 = vld [vmem:[%s1662_s1 + $0x70] sm:$0xff]  ;;  %v1296_v17 = vld [vmem:[%s1662_s1 + $0x78] sm:$0xff]  ;;  %v344_v27 = vsub.f32 0.0, %v1264_v11  ;;  %v346_v29 = vsub.f32 0.0, %v1287_v15  ;;  %v347_v30 = vsub.f32 0.0, %v1282_v14  ;;  %v207_v43 = vld [vmem:[%s1196_s19 + $0x8] sm:$0xff] }
  0x28   : > { %v349_v32 = vsub.f32 0.0, %v1296_v17  ;;  %v348_v33 = vsub.f32 0.0, %v1277_v13  ;;  %v210_v50 = vld [vmem:[%s1196_s19 + $0x20] sm:$0xff]  ;;  %v212_v56 = vld [vmem:[%s1196_s19 + $0x30] sm:$0xff]  ;;  %v215_v62 = vld [vmem:[%s1196_s19 + $0x48] sm:$0xff] }
  0x29   : > { %v206_v63 = vld [vmem:[%s1196_s19] sm:$0xff] }
  0x2c   : > { %265 = vperm.xlu2 %971, %v1223_v4  }
  0x2d   : > { %255 = vperm.xlu1 %970, %v1228_v5   ;;  %245 = vperm.xlu0 %969, %v1233_v6  }
  0x34   : > { %280 = vperm.xlu2 %971, %v1241_v7  }
  0x35   : > { %275 = vperm.xlu1 %970, %v1246_v8   ;;  %270 = vperm.xlu0 %969, %v1251_v9  }
  0x3c   : > { %295 = vperm.xlu2 %971, %v1259_v10  }
  0x3d   : > { %290 = vperm.xlu1 %970, %v1264_v11   ;;  %285 = vperm.xlu0 %969, %v1269_v12  }
  0x44   : > { %310 = vperm.xlu2 %971, %v1277_v13  }
  0x45   : > { %305 = vperm.xlu1 %970, %v1282_v14   ;;  %300 = vperm.xlu0 %969, %v1287_v15  }
  0x4c   : > { %973 = vset.pattern.permute.xlu2 %v1096_v19 }
  0x4d   : > { %972 = vset.pattern.permute.xlu1 %v1096_v19  ;;  %315 = vperm.xlu0 %969, %v1296_v17  }
  0x4e   : > { %357 = vperm.xlu2 %973, %v335_v16   ;;  %352 = vperm.xlu1 %972, %v334_v18  }
  0x55   : > { %974 = vset.pattern.permute.xlu0 %v1096_v19 }
  0x56   : > { %372 = vperm.xlu2 %973, %v338_v20   ;;  %362 = vperm.xlu0 %974, %v336_v21  }
  0x57   : > { %367 = vperm.xlu1 %972, %v337_v22  }
  0x5e   : > { %382 = vperm.xlu2 %973, %v340_v23   ;;  %387 = vperm.xlu0 %974, %v341_v24   ;;  %v211_v23 = vld [vmem:[%s1196_s19 + $0x28] sm:$0xff]  ;;  %v213_v24 = vld [vmem:[%s1196_s19 + $0x38] sm:$0xff] }
  0x5f   : > { %377 = vperm.xlu1 %972, %v339_v25  }
  0x66   : > { %397 = vperm.xlu2 %973, %v343_v26   ;;  %402 = vperm.xlu0 %974, %v344_v27  }
  0x67   : > { %392 = vperm.xlu1 %972, %v342_v28  }
  0x6e   : > { %412 = vperm.xlu2 %973, %v346_v29   ;;  %417 = vperm.xlu0 %974, %v347_v30  }
  0x6f   : > { %407 = vperm.xlu1 %972, %v345_v31  }
  0x76   : > { %427 = vperm.xlu2 %973, %v349_v32   ;;  %447 = vperm.xlu0 %974, %v1215_v3  }
  0x77   : > { %422 = vperm.xlu1 %972, %v348_v33   ;;  %v216_v33 = vld [vmem:[%s1196_s19 + $0x50] sm:$0xff] }
  0x7e   : > { %455 = vperm.xlu2 %973, %v1210_v2   ;;  %459 = vperm.xlu0 %974, %v1228_v5   ;;  %v261_v34 = vpop.permute.xlu2 %260 }
  0x7f   : > { %451 = vperm.xlu1 %972, %v1233_v6   ;;  %v1349_v51 = vmul.f32 %v261_v34, %v210_v50 }
  0x86   : > { %467 = vperm.xlu2 %973, %v1223_v4   ;;  %471 = vperm.xlu0 %974, %v1251_v9   ;;  %v1321_v35 = vpop.permute.xlu2 %265 }
  0x87   : > { %463 = vperm.xlu1 %972, %v1205_v1  }
  0x8e   : > { %479 = vperm.xlu2 %973, %v1241_v7   ;;  %483 = vperm.xlu0 %974, %v1269_v12   ;;  %v1326_v36 = vpop.permute.xlu2 %280 }
  0x8f   : > { %475 = vperm.xlu1 %972, %v1246_v8  }
  0x96   : > { %491 = vperm.xlu2 %973, %v1259_v10   ;;  %495 = vperm.xlu0 %974, %v1287_v15   ;;  %v1331_v37 = vpop.permute.xlu2 %295 }
  0x97   : > { %487 = vperm.xlu1 %972, %v1264_v11   ;;  %v251_v38 = vpop.permute.xlu1 %250  ;;  %v241_v39 = vpop.permute.xlu0 %240 }
  0x9e   : > { %503 = vperm.xlu2 %973, %v1277_v13   ;;  %507 = vperm.xlu0 %974, %v1296_v17   ;;  %v1336_v40 = vpop.permute.xlu2 %310 }
  0x9f   : > { %499 = vperm.xlu1 %972, %v1282_v14   ;;  %v256_v41 = vpop.permute.xlu1 %255  ;;  %v246_v42 = vpop.permute.xlu0 %245 }
  0xa0   : > { %v1339_v44 = vmul.f32 %v246_v42, %v207_v43  ;;  %v217_v43 = vld [vmem:[%s1196_s19 + $0x58] sm:$0xff] }
  0xa6   : > { %976 = vset.pattern.permute.xlu2 %v1097_v45  ;;  %977 = vset.pattern.permute.xlu0 %v1097_v45 }
  0xa7   : > { %975 = vset.pattern.permute.xlu1 %v1097_v45  ;;  %v276_v46 = vpop.permute.xlu1 %275  ;;  %547 = vperm.xlu2 %976, %v1233_v6   ;;  %v271_v47 = vpop.permute.xlu0 %270  ;;  %v219_v45 = vld [vmem:[%s1196_s19 + $0x68] sm:$0xff] }
  0xa8   : > { %551 = vperm.xlu0 %977, %v1210_v2   ;;  %v1343_v48 = vpop.permute.xlu2 %357  ;;  %543 = vperm.xlu1 %975, %v1215_v3   ;;  %v1359_v57 = vmul.f32 %v271_v47, %v212_v56  ;;  %v1416_v26 = vmul.f32 %v276_v46, %v213_v24  ;;  %v1450_v46 = vmul.f32 %v1331_v37, %v217_v43 }
  0xa9   : > { %v431_v49 = vmax.f32 %v1343_v48, %v1339_v44 }
  0xaf   : > { %v291_v52 = vpop.permute.xlu1 %290  ;;  %559 = vperm.xlu2 %976, %v1205_v1   ;;  %v286_v53 = vpop.permute.xlu0 %285  ;;  %v1372_v1 = vmul.f32 %v241_v39, %v206_v63 }
  0xb0   : > { %571 = vperm.xlu0 %977, %v1246_v8   ;;  %v1353_v54 = vpop.permute.xlu2 %372  ;;  %555 = vperm.xlu1 %975, %v1228_v5   ;;  %v1370_v0 = vmul.f32 %v286_v53, %v215_v62  ;;  %v218_v8 = vld [vmem:[%s1196_s19 + $0x60] sm:$0xff] }
  0xb1   : > { %v434_v55 = vmax.f32 %v1353_v54, %v1349_v51 }
  0xb7   : > { %v306_v58 = vpop.permute.xlu1 %305  ;;  %567 = vperm.xlu2 %976, %v1251_v9   ;;  %v301_v59 = vpop.permute.xlu0 %300  ;;  %v208_v9 = vld [vmem:[%s1196_s19 + $0x10] sm:$0xff] }
  0xb8   : > { %583 = vperm.xlu0 %977, %v1264_v11   ;;  %v1363_v60 = vpop.permute.xlu2 %382  ;;  %563 = vperm.xlu1 %975, %v1223_v4   ;;  %v209_v11 = vld [vmem:[%s1196_s19 + $0x18] sm:$0xff] }
  0xb9   : > { %v436_v61 = vmax.f32 %v1363_v60, %v1359_v57  ;;  %v1392_v16 = vmul.f32 %v256_v41, %v209_v11 }
  0xbf   : > { %579 = vperm.xlu2 %976, %v1269_v12   ;;  %v316_v2 = vpop.permute.xlu0 %315  ;;  %v1388_v12 = vmul.f32 %v301_v59, %v218_v8  ;;  %v220_v59 = vld [vmem:[%s1196_s19 + $0x70] sm:$0xff] }
  0xc0   : > { %595 = vperm.xlu0 %977, %v1282_v14   ;;  %v1376_v3 = vpop.permute.xlu2 %397  ;;  %575 = vperm.xlu1 %975, %v1241_v7   ;;  %v1381_v5 = vpop.permute.xlu1 %352  ;;  %v1390_v14 = vmul.f32 %v251_v38, %v208_v9  ;;  %v1466_v62 = vmul.f32 %v1336_v40, %v220_v59 }
  0xc1   : > { %v439_v4 = vmax.f32 %v1376_v3, %v1370_v0  ;;  %v430_v6 = vmax.f32 %v1381_v5, %v1372_v1 }
  0xc7   : > { %591 = vperm.xlu2 %976, %v1287_v15   ;;  %v221_v15 = vld [vmem:[%s1196_s19 + $0x78] sm:$0xff] }
  0xc8   : > { %v1395_v7 = vpop.permute.xlu2 %412  ;;  %587 = vperm.xlu1 %975, %v1259_v10   ;;  %v1400_v19 = vpop.permute.xlu0 %362  ;;  %v1411_v25 = vmul.f32 %v316_v2, %v221_v15  ;;  %v1414_v10 = vmul.f32 %v1321_v35, %v211_v23 }
  0xc9   : > { %v442_v18 = vmax.f32 %v1395_v7, %v1388_v12  ;;  %v1402_v20 = vpop.permute.xlu1 %367  ;;  %v432_v21 = vmax.f32 %v1400_v19, %v1390_v14 }
  0xca   : > { %v433_v22 = vmax.f32 %v1402_v20, %v1392_v16 }
  0xcf   : > { %603 = vperm.xlu2 %976, %v1296_v17   ;;  %v214_v17 = vld [vmem:[%s1196_s19 + $0x40] sm:$0xff]  ;;  %s1499_s19 = scalar_lea.vmem [#allocation5], %s764_s18  ;;  %s767_s18 = sshll.u32 %s1082_s12, 3 }
  0xd0   : > { %v1419_v27 = vpop.permute.xlu2 %427  ;;  %599 = vperm.xlu1 %975, %v1277_v13   ;;  %v1424_v29 = vpop.permute.xlu0 %387  ;;  %v1435_v34 = vmul.f32 %v1326_v36, %v214_v17  ;;  %v1437_v13 = vmul.f32 %v291_v52, %v216_v33  ;;  %v1452_v36 = vmul.f32 %v306_v58, %v219_v45  ;;  %s652_s29 = scalar_lea.hbm %s1663_s2, %s767_s18  ;;  %s653_s30 = sshll.u32 %s1499_s19, 4  ;;  %s654_s30 = int_to_ptr.vmem [resolvable:$true] %s653_s30 }
  0xd1   : > { %v1426_v30 = vpop.permute.xlu1 %377  ;;  %v437_v31 = vmax.f32 %v1424_v29, %v1416_v26  ;;  %s655_s21 = sshll.u32 %s652_s29, 4  ;;  %s639_s12 = scalar_lea.sflag [#allocation4], %s1190_s16  ;;  %s656_s21 = int_to_ptr.hbm [resolvable:$true] %s655_s21 }
  0xd2   : > { %v435_v32 = vmax.f32 %v1426_v30, %v1414_v10  ;;  %v1669_v10 = vmax.f32 %v1419_v27, %v1411_v25  ;;  %s1022_s3 = sshra.s32 %s656_s21, 4  ;;  %s1023_s3 = int_to_ptr.hbm [resolvable:$true] %s1022_s3 }
  0xd3   : > { %s1024_s4 = scalar_lea.hbm %s1023_s3, 128  ;;  %p1029_p7 = scmp.lt.s32.totalorder %s1023_s3, %s1663_s2 }
  0xd4   : > { %p1025_p4 = scmp.ne.s32.totalorder %s1023_s3, %s1024_s4  ;;  %p1030_p8 = scmp.lt.s32.totalorder %s1028_s7, %s1024_s4 }
  0xd6   : > { %p1026_p5 = pnand %p1025_p4, %p1167_p9  ;;  %p1031_p10 = por %p1030_p8, %p1029_p7 }
  0xd8   : > { %v456_v35 = vpop.permute.xlu2 %455  ;;  %v1439_v38 = vpop.permute.xlu0 %402  ;;  %p1027_p6 = pneg %p1026_p5 }
  0xd9   : > { %v1441_v39 = vpop.permute.xlu1 %392 }
  0xda   : > { %p1032_p13 = pnand %p1031_p10, %p1027_p6 }
  0xe0   : > { %v1454_v47 = vpop.permute.xlu2 %467  ;;  %v1456_v50 = vpop.permute.xlu0 %417 }
  0xe1   : > { %v1458_v52 = vpop.permute.xlu1 %407 }
  0xe8   : > { %v1468_v37 = vpop.permute.xlu2 %479  ;;  %v448_v58 = vpop.permute.xlu0 %447 }
  0xe9   : > { %v1470_v63 = vpop.permute.xlu1 %422  ;;  %v1495_v57 = vmin.f32 %v448_v58, %v430_v6 }
  0xeb   : > { %v772_v1 = vcvt.f32.s32 %v1495_v57  ;;  %v775_v20 = vand.u32 2147483648, %v1495_v57 }
  0xf0   : > { %v1474_v8 = vpop.permute.xlu2 %491  ;;  %v460_v9 = vpop.permute.xlu0 %459 }
  0xf1   : > { %v452_v11 = vpop.permute.xlu1 %451 }
  0xf2   : > { %v511_v15 = vmin.f32 %v452_v11, %v431_v49 }
  0xf4   : > { %v780_v23 = vcvt.f32.s32 %v511_v15  ;;  %v783_v2 = vand.u32 2147483648, %v511_v15  ;;  %v778_v56 = vand.u32 2147483647, %v511_v15 }
  0xf6   : > { %v781_v24 = vcvt.s32.f32 %v780_v23  ;;  %vm779_vm0 = vcmp.lt.f32.partialorder %v778_v56, 8388608.0 }
  0xf8   : > { %v1479_v40 = vpop.permute.xlu2 %503  ;;  %v472_v17 = vpop.permute.xlu0 %471  ;;  %v782_v45 = vand.u32 2147483647, %v781_v24 }
  0xf9   : > { %v464_v33 = vpop.permute.xlu1 %463  ;;  %v516_v44 = vmin.f32 %v472_v17, %v436_v61  ;;  %v1524_v17 = vmin.f32 %v460_v9, %v433_v22  ;;  %v1535_v22 = vmin.f32 %v1454_v47, %v435_v32 }
  0xfa   : > { %v514_v43 = vmin.f32 %v464_v33, %v434_v55  ;;  %v784_v48 = vor.u32 %v783_v2, %v782_v45  ;;  %v1490_v55 = vmin.f32 %v456_v35, %v432_v21 }
  0xfb   : > { %v820_v42 = vcvt.f32.s32 %v516_v44  ;;  %v823_v2 = vand.u32 2147483648, %v516_v44  ;;  %v818_v3 = vand.u32 2147483647, %v516_v44 }
  0xfc   : > { %v804_v59 = vcvt.f32.s32 %v514_v43  ;;  %v785_v28 = vsel %vm779_vm0, %v784_v48, %v511_v15  ;;  %v807_v54 = vand.u32 2147483648, %v514_v43  ;;  %v802_v60 = vand.u32 2147483647, %v514_v43 }
  0xfd   : > { %v821_v19 = vcvt.s32.f32 %v820_v42  ;;  %v788_v21 = vcvt.f32.s32 %v1490_v55  ;;  %vm819_vm2 = vcmp.lt.f32.partialorder %v818_v3, 8388608.0  ;;  %v791_v16 = vand.u32 2147483648, %v1490_v55 }
  0xfe   : > { %v805_v49 = vcvt.s32.f32 %v804_v59  ;;  %vm803_vm1 = vcmp.lt.f32.partialorder %v802_v60, 8388608.0  ;;  %v796_v59 = vcvt.f32.s32 %v1524_v17  ;;  %v1668_v60 = vmax.f32 %v1439_v38, %v1437_v13 }
  0xff   : > { %v822_v56 = vand.u32 2147483647, %v821_v19 }
 0x100   : > { %v484_v11 = vpop.permute.xlu0 %483  ;;  %v806_v41 = vand.u32 2147483647, %v805_v49  ;;  %v786_v49 = vand.u32 2147483647, %v1490_v55  ;;  %v797_v19 = vcvt.s32.f32 %v796_v59 }
 0x101   : > { %v476_v23 = vpop.permute.xlu1 %475  ;;  %v548_v53 = vpop.permute.xlu2 %547  ;;  %v1505_v61 = vmin.f32 %v484_v11, %v439_v4  ;;  %v789_v4 = vcvt.s32.f32 %v788_v21  ;;  %v824_v15 = vor.u32 %v823_v2, %v822_v56  ;;  %v812_v21 = vcvt.f32.s32 %v1535_v22 }
 0x102   : > { %v607_v51 = vmul.f32 %v785_v28, %v548_v53  ;;  %v808_v14 = vor.u32 %v807_v54, %v806_v41  ;;  %v1513_v0 = vmin.f32 %v476_v23, %v437_v31  ;;  %v773_v41 = vcvt.s32.f32 %v772_v1 }
 0x103   : > { %v844_v28 = vcvt.f32.s32 %v1505_v61  ;;  %v790_v33 = vand.u32 2147483647, %v789_v4  ;;  %v825_v7 = vsel %vm819_vm2, %v824_v15, %v516_v44  ;;  %v847_v9 = vand.u32 2147483648, %v1505_v61 }
 0x104   : > { %623 = vst [vmem:[%s1499_s19 + $0x8] sm:$0xff] %v607_v51  ;;  %v809_v53 = vsel %vm803_vm1, %v808_v14, %v514_v43  ;;  %v828_v26 = vcvt.f32.s32 %v1513_v0  ;;  %v774_v43 = vand.u32 2147483647, %v773_v41  ;;  %v770_v44 = vand.u32 2147483647, %v1495_v57 }
 0x105   : > { %v845_v24 = vcvt.s32.f32 %v844_v28  ;;  %v842_v11 = vand.u32 2147483647, %v1505_v61  ;;  %v792_v23 = vor.u32 %v791_v16, %v790_v33  ;;  %vm787_vm3 = vcmp.lt.f32.partialorder %v786_v49, 8388608.0 }
 0x106   : > { %v776_v51 = vor.u32 %v775_v20, %v774_v43  ;;  %v829_v54 = vcvt.s32.f32 %v828_v26  ;;  %vm1553_vm4 = vcmp.lt.f32.partialorder %v770_v44, 8388608.0  ;;  %v798_v3 = vand.u32 2147483647, %v797_v19 }
 0x107   : > { %vm843_vm5 = vcmp.lt.f32.partialorder %v842_v11, 8388608.0  ;;  %v793_v13 = vsel %vm787_vm3, %v792_v23, %v1490_v55  ;;  %v831_v55 = vand.u32 2147483648, %v1513_v0  ;;  %v826_v41 = vand.u32 2147483647, %v1513_v0 }
 0x108   : > { %v496_v5 = vpop.permute.xlu0 %495  ;;  %v777_v38 = vsel %vm1553_vm4, %v776_v51, %v1495_v57  ;;  %v830_v25 = vand.u32 2147483647, %v829_v54  ;;  %v813_v15 = vcvt.s32.f32 %v812_v21  ;;  %v794_v26 = vand.u32 2147483647, %v1524_v17 }
 0x109   : > { %v488_v6 = vpop.permute.xlu1 %487  ;;  %v560_v35 = vpop.permute.xlu2 %559  ;;  %v1519_v42 = vmin.f32 %v496_v5, %v442_v18  ;;  %v846_v18 = vand.u32 2147483647, %v845_v24  ;;  %v1672_v33 = vmax.f32 %v1456_v50, %v1452_v36  ;;  %vm827_vm6 = vcmp.lt.f32.partialorder %v826_v41, 8388608.0 }
 0x10a   : > { %v610_v58 = vmul.f32 %v809_v53, %v560_v35  ;;  %v1545_v14 = vmin.f32 %v488_v6, %v1668_v60  ;;  %v810_v16 = vand.u32 2147483647, %v1535_v22  ;;  %vm795_vm8 = vcmp.lt.f32.partialorder %v794_v26, 8388608.0 }
 0x10b   : > { %v868_v45 = vcvt.f32.s32 %v1519_v42  ;;  %v848_v32 = vor.u32 %v847_v9, %v846_v18  ;;  %v871_v4 = vand.u32 2147483648, %v1519_v42  ;;  %v866_v24 = vand.u32 2147483647, %v1519_v42 }
 0x10c   : > { %626 = vst [vmem:[%s1499_s19 + $0x20] sm:$0xff] %v610_v58  ;;  %v852_v27 = vcvt.f32.s32 %v1545_v14  ;;  %v1673_v18 = vmax.f32 %v1441_v39, %v1435_v34  ;;  %v814_v50 = vand.u32 2147483647, %v813_v15  ;;  %v855_v60 = vand.u32 2147483648, %v1545_v14 }
 0x10d   : > { %v869_v47 = vcvt.s32.f32 %v868_v45  ;;  %v849_v28 = vsel %vm843_vm5, %v848_v32, %v1505_v61  ;;  %v832_v61 = vor.u32 %v831_v55, %v830_v25  ;;  %vm867_vm7 = vcmp.lt.f32.partialorder %v866_v24, 8388608.0 }
 0x10e   : > { %v1581_v59 = vmin.f32 %v1468_v37, %v1673_v18  ;;  %v850_v32 = vand.u32 2147483647, %v1545_v14  ;;  %vm811_vm11 = vcmp.lt.f32.partialorder %v810_v16, 8388608.0 }
 0x10f   : > { %v870_v53 = vand.u32 2147483647, %v869_v47  ;;  %v833_v36 = vsel %vm827_vm6, %v832_v61, %v1513_v0 }
 0x110   : > { %v508_v29 = vpop.permute.xlu0 %507  ;;  %v836_v49 = vcvt.f32.s32 %v1581_v59  ;;  %vm851_vm10 = vcmp.lt.f32.partialorder %v850_v32, 8388608.0 }
 0x111   : > { %v500_v31 = vpop.permute.xlu1 %499  ;;  %v568_v12 = vpop.permute.xlu2 %567  ;;  %v1550_v30 = vmin.f32 %v508_v29, %v1669_v10  ;;  %v799_v29 = vand.u32 2147483648, %v1524_v17  ;;  %v872_v45 = vor.u32 %v871_v4, %v870_v53  ;;  %v815_v10 = vand.u32 2147483648, %v1535_v22 }
 0x112   : > { %v612_v48 = vmul.f32 %v825_v7, %v568_v12  ;;  %v1574_v43 = vmin.f32 %v500_v31, %v1672_v33  ;;  %v853_v7 = vcvt.s32.f32 %v852_v27 }
 0x113   : > { %v892_v5 = vcvt.f32.s32 %v1550_v30  ;;  %v873_v9 = vsel %vm867_vm7, %v872_v45, %v1519_v42  ;;  %v895_v54 = vand.u32 2147483648, %v1550_v30  ;;  %v890_v42 = vand.u32 2147483647, %v1550_v30 }
 0x114   : > { %628 = vst [vmem:[%s1499_s19 + $0x30] sm:$0xff] %v612_v48  ;;  %v800_v48 = vor.u32 %v799_v29, %v798_v3  ;;  %v876_v31 = vcvt.f32.s32 %v1574_v43  ;;  %v854_v37 = vand.u32 2147483647, %v853_v7  ;;  %v816_v21 = vor.u32 %v815_v10, %v814_v50 }
 0x115   : > { %v893_v12 = vcvt.s32.f32 %v892_v5  ;;  %vm891_vm9 = vcmp.lt.f32.partialorder %v890_v42, 8388608.0  ;;  %v874_v55 = vand.u32 2147483647, %v1574_v43 }
 0x116   : > { %v801_v0 = vsel %vm795_vm8, %v800_v48, %v1524_v17  ;;  %v856_v19 = vor.u32 %v855_v60, %v854_v37  ;;  %v877_v1 = vcvt.s32.f32 %v876_v31  ;;  %v1674_v17 = vmax.f32 %v1458_v52, %v1450_v46 }
 0x117   : > { %v894_v39 = vand.u32 2147483647, %v893_v12  ;;  %vm875_vm12 = vcmp.lt.f32.partialorder %v874_v55, 8388608.0 }
 0x119   : > { %v580_v6 = vpop.permute.xlu2 %579  ;;  %v896_v47 = vor.u32 %v895_v54, %v894_v39 }
 0x11a   : > { %v552_v35 = vpop.permute.xlu0 %551  ;;  %v615_v56 = vmul.f32 %v849_v28, %v580_v6  ;;  %v544_v2 = vpop.permute.xlu1 %543  ;;  %v857_v6 = vsel %vm851_vm10, %v856_v19, %v1545_v14  ;;  %v817_v28 = vsel %vm811_vm11, %v816_v21, %v1535_v22  ;;  %v834_v22 = vand.u32 2147483647, %v1581_v59 }
 0x11b   : > { %v608_v58 = vmul.f32 %v793_v13, %v552_v35  ;;  %v606_v57 = vmul.f32 %v777_v38, %v544_v2  ;;  %v521_v13 = vmin.f32 %v1474_v8, %v1674_v17  ;;  %v837_v38 = vcvt.s32.f32 %v836_v49 }
 0x11c   : > { %631 = vst [vmem:[%s1499_s19 + $0x48] sm:$0xff] %v615_v56  ;;  %v897_v27 = vsel %vm891_vm9, %v896_v47, %v1550_v30  ;;  %v878_v35 = vand.u32 2147483647, %v877_v1  ;;  %v879_v2 = vand.u32 2147483648, %v1574_v43  ;;  %v839_v30 = vand.u32 2147483648, %v1581_v59 }
 0x11d   : > { %624 = vst [vmem:[%s1499_s19 + $0x10] sm:$0xff] %v608_v58  ;;  %v860_v46 = vcvt.f32.s32 %v521_v13  ;;  %v838_v56 = vand.u32 2147483647, %v837_v38  ;;  %v1675_v14 = vmax.f32 %v1470_v63, %v1466_v62  ;;  %vm835_vm13 = vcmp.lt.f32.partialorder %v834_v22, 8388608.0 }
 0x11e   : > { %622 = vst [vmem:[%s1499_s19] sm:$0xff] %v606_v57  ;;  %v880_v3 = vor.u32 %v879_v2, %v878_v35  ;;  %v863_v63 = vand.u32 2147483648, %v521_v13 }
 0x11f   : > { %v524_v57 = vmin.f32 %v1479_v40, %v1675_v14  ;;  %v840_v4 = vor.u32 %v839_v30, %v838_v56  ;;  %v861_v41 = vcvt.s32.f32 %v860_v46  ;;  %v858_v40 = vand.u32 2147483647, %v521_v13 }
 0x120   : > { %v881_v24 = vsel %vm875_vm12, %v880_v3, %v1574_v43 }
 0x121   : > { %v592_v20 = vpop.permute.xlu2 %591  ;;  %v884_v61 = vcvt.f32.s32 %v524_v57  ;;  %v841_v33 = vsel %vm835_vm13, %v840_v4, %v1581_v59  ;;  %v862_v45 = vand.u32 2147483647, %v861_v41  ;;  %vm859_vm14 = vcmp.lt.f32.partialorder %v858_v40, 8388608.0 }
 0x122   : > { %v572_v34 = vpop.permute.xlu0 %571  ;;  %v618_v44 = vmul.f32 %v873_v9, %v592_v20  ;;  %v556_v23 = vpop.permute.xlu1 %555  ;;  %v882_v59 = vand.u32 2147483647, %v524_v57 }
 0x123   : > { %v613_v11 = vmul.f32 %v833_v36, %v572_v34  ;;  %v609_v51 = vmul.f32 %v801_v0, %v556_v23  ;;  %v864_v12 = vor.u32 %v863_v63, %v862_v45  ;;  %v885_v7 = vcvt.s32.f32 %v884_v61 }
 0x124   : > { %634 = vst [vmem:[%s1499_s19 + $0x60] sm:$0xff] %v618_v44  ;;  %v887_v36 = vand.u32 2147483648, %v524_v57  ;;  %vm883_vm15 = vcmp.lt.f32.partialorder %v882_v59, 8388608.0 }
 0x125   : > { %629 = vst [vmem:[%s1499_s19 + $0x38] sm:$0xff] %v613_v11  ;;  %v865_v43 = vsel %vm859_vm14, %v864_v12, %v521_v13  ;;  %v886_v48 = vand.u32 2147483647, %v885_v7 }
 0x126   : > { %625 = vst [vmem:[%s1499_s19 + $0x18] sm:$0xff] %v609_v51 }
 0x127   : > { %v888_v50 = vor.u32 %v887_v36, %v886_v48 }
 0x129   : > { %v604_v25 = vpop.permute.xlu2 %603  ;;  %v889_v20 = vsel %vm883_vm15, %v888_v50, %v524_v57 }
 0x12a   : > { %v584_v5 = vpop.permute.xlu0 %583  ;;  %v621_v52 = vmul.f32 %v897_v27, %v604_v25  ;;  %v564_v53 = vpop.permute.xlu1 %563 }
 0x12b   : > { %v616_v8 = vmul.f32 %v857_v6, %v584_v5  ;;  %v611_v58 = vmul.f32 %v817_v28, %v564_v53 }
 0x12c   : > { %637 = vst [vmem:[%s1499_s19 + $0x78] sm:$0xff] %v621_v52 }
 0x12d   : > { %632 = vst [vmem:[%s1499_s19 + $0x50] sm:$0xff] %v616_v8 }
 0x12e   : > { %627 = vst [vmem:[%s1499_s19 + $0x28] sm:$0xff] %v611_v58 }
 0x132   : > { %v596_v15 = vpop.permute.xlu0 %595  ;;  %v576_v29 = vpop.permute.xlu1 %575 }
 0x133   : > { %v619_v26 = vmul.f32 %v881_v24, %v596_v15  ;;  %v614_v62 = vmul.f32 %v841_v33, %v576_v29 }
 0x135   : > { %635 = vst [vmem:[%s1499_s19 + $0x68] sm:$0xff] %v619_v26 }
 0x136   : > { %630 = vst [vmem:[%s1499_s19 + $0x40] sm:$0xff] %v614_v62 }
 0x13a   : > { %v588_v18 = vpop.permute.xlu1 %587 }
 0x13b   : > { %v617_v16 = vmul.f32 %v865_v43, %v588_v18 }
 0x13d   : > { %633 = vst [vmem:[%s1499_s19 + $0x58] sm:$0xff] %v617_v16 }
 0x142   : > { %v600_v31 = vpop.permute.xlu1 %599 }
 0x143   : > { %v620_v9 = vmul.f32 %v889_v20, %v600_v31 }
 0x145   : > { %636 = vst [vmem:[%s1499_s19 + $0x70] sm:$0xff] %v620_v9 }
 0x146   : > { %1035 = shalt.err (!%p1032_p13)
}
 0x147   : > { %s1098_s16 = smov 128   ;;  %s1099_s20 = smov 256  }
 0x148   : > { %s1100_s25 = smov 8  }
 0x149   : > { %900 = dma.vmem_to_hbm [thread:$0]  (%p1167_p9), %s654_s30, 2048, %s656_s21, %s639_s12, %s1098_s16, %s1099_s20, %s1100_s25  }
 0x14a PF: > { %s670_s26 = sand.u32 1, %s1070_s9   ;;  %p907_p0 = pnand %p760_p12, %p1174_p11 }
 0x14b   : > { %s671_s19 = scalar_lea.sflag [#allocation4], %s670_s26 }
 0x14c   : > { %p908_p1 = pneg %p907_p0 }
 0x14e   : > { %1065 = dma.done.wait (%p908_p1), %s671_s19, 2048  }
 0x14f   : > { %1067 = vsyncadd (%p908_p1), %s671_s19, 4294965248  ;;  %s18_s14 = sadd.s32 1, %s1090_s14   ;;  %s1676_s9 = smov %s1074_s10 }
 0x150   : > { %p15_p2 = scmp.ge.s32.totalorder %s18_s14, 4   ;;  %s1677_s10 = smov %s1078_s11 }
 0x151   : > { %s1678_s11 = smov %s1172_s23  ;;  %s1679_s12 = smov %s1086_s13 }
 0x152   : > { %s1680_s13 = smov %s1682_s17  ;;  %17 = sbr.rel (!%p15_p2) target bundleno = 6 (0x6), region = 76 }
 0x157   :  { %677 = vsyncpa [#allocation3], 1 }
 0x158   :  { %679 = vsyncpa [#allocation3 + $0x1], 1 }
 0x159   :  { %680 = vsyncpa [#allocation4], 1 }
 0x15a   :  { %682 = vsyncpa [#allocation4 + $0x1], 1 }

</bundles_post_ra>
